<compile_context>
chip_gen: v6e
topology: v6e:2x2x1
jax: 0.10.0
libtpu: 0.0.40
codegen_flags: <defaults>
</compile_context>

<pallas_src>
from functools import partial

import jax
import jax.numpy as jnp
from jax.experimental import pallas as pl
from jax.experimental.pallas import tpu as pltpu

_MIN_ROWS = 16                        # bf16 sublane packing: tiles % 16 == 0
_LANE_ROWS = 128                      # lane-dense output: tiles % 128 when B >= 128
_VMEM_BUDGET = 40 * 1024 * 1024       # per-core budget, safe on v7x's 64 MiB VMEM


def _round_up(x, m):
    return (x + m - 1) // m * m


# --------------------------------------------------------------------------- #
# Kernel                                                                      #
# --------------------------------------------------------------------------- #
def _mlp_kernel(x_ref,
                w1_ref, b1_ref,
                w2_ref, b2_ref,
                w3_ref, b3_ref,
                w4_ref, b4_ref,
                w5t_ref, b5_ref,
                o_ref):
    # In-kernel cast to bf16 for the wide MXU layers (hides under input DMA).
    x = x_ref[...].astype(jnp.bfloat16)                                # (T, F)

    # Layer 1: Linear(F, 128) + ReLU   (bf16 operands, f32 accumulation)
    h = jnp.dot(x, w1_ref[...], preferred_element_type=jnp.float32) + b1_ref[...]
    h = jnp.maximum(h, 0.0)
    # Dropout(0.1): identity in eval/inference mode.
    # TODO(synk): training-mode dropout (pltpu.prng_* masking) intentionally omitted.

    # Layer 2: Linear(128, 64) + ReLU  (bf16 operands, f32 accumulation)
    h = jnp.dot(h.astype(jnp.bfloat16), w2_ref[...],
                preferred_element_type=jnp.float32) + b2_ref[...]
    h = jnp.maximum(h, 0.0)

    # Layer 3: Linear(64, 32) + ReLU   (f32 — latency-bound, skip pack casts)
    h = jnp.dot(h, w3_ref[...], preferred_element_type=jnp.float32) + b3_ref[...]
    h = jnp.maximum(h, 0.0)

    # Layer 4: Linear(32, 16) + ReLU   (f32)
    h = jnp.dot(h, w4_ref[...], preferred_element_type=jnp.float32) + b4_ref[...]
    h = jnp.maximum(h, 0.0)                                            # (T, 16) f32

    # Layer 5: Linear(16, 1), produced directly as a lane-dense (1, T) row by
    # contracting the 16-wide feature axis against the transposed weight row.
    out_row = jax.lax.dot_general(
        w5t_ref[...], h, (((1,), (1,)), ((), ())),
        preferred_element_type=jnp.float32) + b5_ref[...]              # (1, T)
    o_ref[0] = out_row.astype(o_ref.dtype)


# --------------------------------------------------------------------------- #
# Host-side wrapper                                                           #
# --------------------------------------------------------------------------- #
def prepare_params(params):
    """One-time parameter conversion (hoisted out of the per-call hot path)."""
    return {
        "w1": params["w1"].astype(jnp.bfloat16),
        "b1": params["b1"].astype(jnp.float32),
        "w2": params["w2"].astype(jnp.bfloat16),
        "b2": params["b2"].astype(jnp.float32),
        "w3": params["w3"].astype(jnp.float32),
        "b3": params["b3"].astype(jnp.float32),
        "w4": params["w4"].astype(jnp.float32),
        "b4": params["b4"].astype(jnp.float32),
        "w5t": params["w5"].astype(jnp.float32).T,              # (1, 16)
        "b5": params["b5"].astype(jnp.float32).reshape(1, 1),   # (1, 1)
    }


def _select_tile(B, F, batch_tile):
    """Static (trace-time) tile selection."""
    align = _LANE_ROWS if B >= _LANE_ROWS else _MIN_ROWS
    tile = _round_up(min(batch_tile, _round_up(B, align)), align)
    tile = max(tile, align)
    # Keep at least 2 grid steps when the batch allows it, so v7x's two
    # TensorCores both get work from the "parallel" batch axis.
    if B >= 2 * align:
        tile = min(tile, _round_up(pl.cdiv(B, 2), align))

    def fits(t):
        return (2 * t * F * 4            # f32 x tile, double-buffered
                + 2 * t * 4              # lane-dense f32 out row, double-buffered
                + t * 512 * 4            # activation working set (slack)
                + 2 * 64 * 1024          # resident weights/biases (generous)
                ) < _VMEM_BUDGET

    while tile > align and not fits(tile):
        tile -= align
    return tile


@partial(jax.jit, static_argnames=("batch_tile",))
def improved_mlp_forward(x, prepared, *, batch_tile=1024):
    """x: (B, F) float32.  prepared: output of prepare_params()."""
    B, F = x.shape
    tile = _select_tile(B, F, batch_tile)
    num_tiles = pl.cdiv(B, tile)
    b_pad = num_tiles * tile

    # Pad the batch (fused under jit with the rest of the program).
    x_p = x if b_pad == B else jnp.pad(x, ((0, b_pad - B), (0, 0)))

    operands = [
        x_p,
        prepared["w1"], prepared["b1"],
        prepared["w2"], prepared["b2"],
        prepared["w3"], prepared["b3"],
        prepared["w4"], prepared["b4"],
        prepared["w5t"], prepared["b5"],
    ]

    def resident_spec(arr):
        ndim = arr.ndim
        return pl.BlockSpec(arr.shape, lambda i, _n=ndim: (0,) * _n)

    in_specs = [pl.BlockSpec((tile, F), lambda i: (i, 0))]
    in_specs += [resident_spec(a) for a in operands[1:]]
    out_spec = pl.BlockSpec((1, 1, tile), lambda i: (i, 0, 0))

    out3d = pl.pallas_call(
        _mlp_kernel,
        out_shape=jax.ShapeDtypeStruct((num_tiles, 1, tile), jnp.float32),
        grid_spec=pltpu.PrefetchScalarGridSpec(
            num_scalar_prefetch=0,
            grid=(num_tiles,),
            in_specs=in_specs,
            out_specs=out_spec,
        ),
        compiler_params=pltpu.CompilerParams(
            dimension_semantics=("parallel",),   # megacore / v7x TC sharding
            vmem_limit_bytes=48 * 1024 * 1024,   # within v7x's 64 MiB per TC
        ),
    )(*operands)

    # (num_tiles, 1, tile) lane-dense rows -> (B, 1) column, drop padding rows.
    out = out3d.reshape(b_pad)[:B].reshape(B, 1)
    return out.astype(x.dtype)


# --------------------------------------------------------------------------- #
# Init + references                                                           #
# --------------------------------------------------------------------------- #
def init_params(input_size, key):
    """Deterministic init mimicking PyTorch Linear default U(-1/sqrt(fan_in), +)."""
    dims = [input_size, 128, 64, 32, 16, 1]
    params = {}
    for li in range(5):
        fan_in, fan_out = dims[li], dims[li + 1]
        key, kw, kb = jax.random.split(key, 3)
        bound = 1.0 / jnp.sqrt(jnp.float32(fan_in))
        params[f"w{li + 1}"] = jax.random.uniform(
            kw, (fan_in, fan_out), jnp.float32, -bound, bound)
        params[f"b{li + 1}"] = jax.random.uniform(
            kb, (1, fan_out), jnp.float32, -bound, bound)
    return params


def reference_forward_f32(x, params):
    h = x
    for li in range(1, 5):
        h = jnp.maximum(h @ params[f"w{li}"] + params[f"b{li}"], 0.0)
    return h @ params["w5"] + params["b5"]


def reference_forward_kernel_numerics(x, params):
    """Matches kernel numerics: bf16-rounded layers 1-2, f32 layers 3-5."""
    h = x.astype(jnp.bfloat16).astype(jnp.float32)
    w1 = params["w1"].astype(jnp.bfloat16).astype(jnp.float32)
    h = jnp.maximum(h @ w1 + params["b1"], 0.0)
    h = h.astype(jnp.bfloat16).astype(jnp.float32)
    w2 = params["w2"].astype(jnp.bfloat16).astype(jnp.float32)
    h = jnp.maximum(h @ w2 + params["b2"], 0.0)
    h = jnp.maximum(h @ params["w3"] + params["b3"], 0.0)
    h = jnp.maximum(h @ params["w4"] + params["b4"], 0.0)
    return h @ params["w5"] + params["b5"]


if __name__ == "__main__":
    key = jax.random.PRNGKey(0)
    input_size = 32
    batch = 8

    kx, kp = jax.random.split(key)
    x = jax.random.normal(kx, (batch, input_size), jnp.float32)
    params = init_params(input_size, kp)
    prepared = prepare_params(params)          # one-time param prep

    out = improved_mlp_forward(x, prepared)
    out = jax.block_until_ready(out)
    assert out.shape == (batch, 1)

    ref_kn = reference_forward_kernel_numerics(x, params)
    ref_f32 = reference_forward_f32(x, params)
    assert jnp.allclose(out, ref_kn, atol=5e-3, rtol=5e-3), "mismatch vs kernel-numerics reference"
    assert jnp.allclose(out, ref_f32, atol=5e-2, rtol=5e-2), "mismatch vs f32 reference"

    print("KERNEL_OK")
</pallas_src>

<mosaic_0001>
module attributes {stable_mosaic.version = 11 : i64} {
  func.func @_mlp_kernel(%arg0: i32, %arg1: memref<16x32xf32, #tpu.memory_space<vmem>>, %arg2: memref<32x128xbf16, #tpu.memory_space<vmem>>, %arg3: memref<1x128xf32, #tpu.memory_space<vmem>>, %arg4: memref<128x64xbf16, #tpu.memory_space<vmem>>, %arg5: memref<1x64xf32, #tpu.memory_space<vmem>>, %arg6: memref<64x32xf32, #tpu.memory_space<vmem>>, %arg7: memref<1x32xf32, #tpu.memory_space<vmem>>, %arg8: memref<32x16xf32, #tpu.memory_space<vmem>>, %arg9: memref<1x16xf32, #tpu.memory_space<vmem>>, %arg10: memref<1x16xf32, #tpu.memory_space<vmem>>, %arg11: memref<1x1xf32, #tpu.memory_space<vmem>>, %arg12: memref<1x1x16xf32, #tpu.memory_space<vmem>>) attributes {dimension_semantics = [#tpu.dimension_semantics<parallel>], iteration_bounds = array<i64: 1>, scalar_prefetch = 0 : i64, scratch_operands = 0 : i64, tpu.core_type = #tpu.core_type<tc>, window_params = [{transform_indices = @transform_0, window_bounds = array<i64: 16, 32>}, {pipeline_mode = #tpu.pipeline_mode<synchronous>, transform_indices = @transform_1, window_bounds = array<i64: 32, 128>}, {pipeline_mode = #tpu.pipeline_mode<synchronous>, transform_indices = @transform_2, window_bounds = array<i64: 1, 128>}, {pipeline_mode = #tpu.pipeline_mode<synchronous>, transform_indices = @transform_3, window_bounds = array<i64: 128, 64>}, {pipeline_mode = #tpu.pipeline_mode<synchronous>, transform_indices = @transform_4, window_bounds = array<i64: 1, 64>}, {pipeline_mode = #tpu.pipeline_mode<synchronous>, transform_indices = @transform_5, window_bounds = array<i64: 64, 32>}, {pipeline_mode = #tpu.pipeline_mode<synchronous>, transform_indices = @transform_6, window_bounds = array<i64: 1, 32>}, {pipeline_mode = #tpu.pipeline_mode<synchronous>, transform_indices = @transform_7, window_bounds = array<i64: 32, 16>}, {pipeline_mode = #tpu.pipeline_mode<synchronous>, transform_indices = @transform_8, window_bounds = array<i64: 1, 16>}, {pipeline_mode = #tpu.pipeline_mode<synchronous>, transform_indices = @transform_9, window_bounds = array<i64: 1, 16>}, {pipeline_mode = #tpu.pipeline_mode<synchronous>, transform_indices = @transform_10, window_bounds = array<i64: 1, 1>}, {transform_indices = @transform_11, window_bounds = array<i64: 1, 1, 16>}]} {
    %c0 = arith.constant 0 : index
    %c0_0 = arith.constant 0 : index
    %0 = vector.load %arg1[%c0, %c0_0] : memref<16x32xf32, #tpu.memory_space<vmem>>, vector<16x32xf32>
    %1 = arith.truncf %0 : vector<16x32xf32> to vector<16x32xbf16>
    %c0_1 = arith.constant 0 : index
    %c0_2 = arith.constant 0 : index
    %2 = vector.load %arg2[%c0_1, %c0_2] : memref<32x128xbf16, #tpu.memory_space<vmem>>, vector<32x128xbf16>
    %cst = arith.constant dense<0.000000e+00> : vector<16x128xf32>
    %3 = tpu.matmul %1, %2, %cst {dimension_numbers = #tpu.dot_dimension_numbers<[1], [0], [0], [1], [0, 0, 1, 1], [], []>} : vector<16x32xbf16>, vector<32x128xbf16>, vector<16x128xf32> -> vector<16x128xf32>
    %c0_3 = arith.constant 0 : index
    %c0_4 = arith.constant 0 : index
    %4 = vector.load %arg3[%c0_3, %c0_4] : memref<1x128xf32, #tpu.memory_space<vmem>>, vector<1x128xf32>
    %5 = vector.broadcast %4 : vector<1x128xf32> to vector<16x128xf32>
    %6 = arith.addf %3, %5 : vector<16x128xf32>
    %cst_5 = arith.constant 0.000000e+00 : f32
    %7 = vector.broadcast %cst_5 : f32 to vector<16x128xf32>
    %8 = arith.maximumf %6, %7 : vector<16x128xf32>
    %9 = arith.truncf %8 : vector<16x128xf32> to vector<16x128xbf16>
    %c0_6 = arith.constant 0 : index
    %c0_7 = arith.constant 0 : index
    %10 = vector.load %arg4[%c0_6, %c0_7] : memref<128x64xbf16, #tpu.memory_space<vmem>>, vector<128x64xbf16>
    %cst_8 = arith.constant dense<0.000000e+00> : vector<16x64xf32>
    %11 = tpu.matmul %9, %10, %cst_8 {dimension_numbers = #tpu.dot_dimension_numbers<[1], [0], [0], [1], [0, 0, 1, 1], [], []>} : vector<16x128xbf16>, vector<128x64xbf16>, vector<16x64xf32> -> vector<16x64xf32>
    %c0_9 = arith.constant 0 : index
    %c0_10 = arith.constant 0 : index
    %12 = vector.load %arg5[%c0_9, %c0_10] : memref<1x64xf32, #tpu.memory_space<vmem>>, vector<1x64xf32>
    %13 = vector.broadcast %12 : vector<1x64xf32> to vector<16x64xf32>
    %14 = arith.addf %11, %13 : vector<16x64xf32>
    %cst_11 = arith.constant 0.000000e+00 : f32
    %15 = vector.broadcast %cst_11 : f32 to vector<16x64xf32>
    %16 = arith.maximumf %14, %15 : vector<16x64xf32>
    %c0_12 = arith.constant 0 : index
    %c0_13 = arith.constant 0 : index
    %17 = vector.load %arg6[%c0_12, %c0_13] : memref<64x32xf32, #tpu.memory_space<vmem>>, vector<64x32xf32>
    %cst_14 = arith.constant dense<0.000000e+00> : vector<16x32xf32>
    %18 = tpu.matmul %16, %17, %cst_14 {dimension_numbers = #tpu.dot_dimension_numbers<[1], [0], [0], [1], [0, 0, 1, 1], [], []>} : vector<16x64xf32>, vector<64x32xf32>, vector<16x32xf32> -> vector<16x32xf32>
    %c0_15 = arith.constant 0 : index
    %c0_16 = arith.constant 0 : index
    %19 = vector.load %arg7[%c0_15, %c0_16] : memref<1x32xf32, #tpu.memory_space<vmem>>, vector<1x32xf32>
    %20 = vector.broadcast %19 : vector<1x32xf32> to vector<16x32xf32>
    %21 = arith.addf %18, %20 : vector<16x32xf32>
    %cst_17 = arith.constant 0.000000e+00 : f32
    %22 = vector.broadcast %cst_17 : f32 to vector<16x32xf32>
    %23 = arith.maximumf %21, %22 : vector<16x32xf32>
    %c0_18 = arith.constant 0 : index
    %c0_19 = arith.constant 0 : index
    %24 = vector.load %arg8[%c0_18, %c0_19] : memref<32x16xf32, #tpu.memory_space<vmem>>, vector<32x16xf32>
    %cst_20 = arith.constant dense<0.000000e+00> : vector<16x16xf32>
    %25 = tpu.matmul %23, %24, %cst_20 {dimension_numbers = #tpu.dot_dimension_numbers<[1], [0], [0], [1], [0, 0, 1, 1], [], []>} : vector<16x32xf32>, vector<32x16xf32>, vector<16x16xf32> -> vector<16x16xf32>
    %c0_21 = arith.constant 0 : index
    %c0_22 = arith.constant 0 : index
    %26 = vector.load %arg9[%c0_21, %c0_22] : memref<1x16xf32, #tpu.memory_space<vmem>>, vector<1x16xf32>
    %27 = vector.broadcast %26 : vector<1x16xf32> to vector<16x16xf32>
    %28 = arith.addf %25, %27 : vector<16x16xf32>
    %cst_23 = arith.constant 0.000000e+00 : f32
    %29 = vector.broadcast %cst_23 : f32 to vector<16x16xf32>
    %30 = arith.maximumf %28, %29 : vector<16x16xf32>
    %c0_24 = arith.constant 0 : index
    %c0_25 = arith.constant 0 : index
    %31 = vector.load %arg10[%c0_24, %c0_25] : memref<1x16xf32, #tpu.memory_space<vmem>>, vector<1x16xf32>
    %cst_26 = arith.constant dense<0.000000e+00> : vector<1x16xf32>
    %32 = tpu.matmul %31, %30, %cst_26 {dimension_numbers = #tpu.dot_dimension_numbers<[1], [1], [0], [0], [0, 0, 1, 0], [], []>} : vector<1x16xf32>, vector<16x16xf32>, vector<1x16xf32> -> vector<1x16xf32>
    %c0_27 = arith.constant 0 : index
    %c0_28 = arith.constant 0 : index
    %33 = vector.load %arg11[%c0_27, %c0_28] : memref<1x1xf32, #tpu.memory_space<vmem>>, vector<1x1xf32>
    %34 = vector.broadcast %33 : vector<1x1xf32> to vector<1x16xf32>
    %35 = arith.addf %32, %34 : vector<1x16xf32>
    %c0_29 = arith.constant 0 : index
    %c0_30 = arith.constant 0 : index
    %c0_31 = arith.constant 0 : index
    %36 = vector.load %arg12[%c0_29, %c0_30, %c0_31] : memref<1x1x16xf32, #tpu.memory_space<vmem>>, vector<1x1x16xf32>
    %37 = vector.shape_cast %36 : vector<1x1x16xf32> to vector<1x16xf32>
    %38 = vector.shape_cast %35 : vector<1x16xf32> to vector<1x1x16xf32>
    tpu.vector_store %arg12[%c0_29, %c0_30, %c0_31], %38 {strides = array<i32>} : memref<1x1x16xf32, #tpu.memory_space<vmem>>, vector<1x1x16xf32>,
    return
  }
  func.func @transform_0(%arg0: i32) -> (i32, i32) {
    %c0_i32 = arith.constant 0 : i32
    %c0_i32_0 = arith.constant 0 : i32
    return %arg0, %c0_i32 : i32, i32
  }
  func.func @transform_1(%arg0: i32) -> (i32, i32) {
    %c0_i32 = arith.constant 0 : i32
    %c0_i32_0 = arith.constant 0 : i32
    %c0_i32_1 = arith.constant 0 : i32
    return %c0_i32, %c0_i32_0 : i32, i32
  }
  func.func @transform_2(%arg0: i32) -> (i32, i32) {
    %c0_i32 = arith.constant 0 : i32
    %c0_i32_0 = arith.constant 0 : i32
    %c0_i32_1 = arith.constant 0 : i32
    return %c0_i32, %c0_i32_0 : i32, i32
  }
  func.func @transform_3(%arg0: i32) -> (i32, i32) {
    %c0_i32 = arith.constant 0 : i32
    %c0_i32_0 = arith.constant 0 : i32
    %c0_i32_1 = arith.constant 0 : i32
    return %c0_i32, %c0_i32_0 : i32, i32
  }
  func.func @transform_4(%arg0: i32) -> (i32, i32) {
    %c0_i32 = arith.constant 0 : i32
    %c0_i32_0 = arith.constant 0 : i32
    %c0_i32_1 = arith.constant 0 : i32
    return %c0_i32, %c0_i32_0 : i32, i32
  }
  func.func @transform_5(%arg0: i32) -> (i32, i32) {
    %c0_i32 = arith.constant 0 : i32
    %c0_i32_0 = arith.constant 0 : i32
    %c0_i32_1 = arith.constant 0 : i32
    return %c0_i32, %c0_i32_0 : i32, i32
  }
  func.func @transform_6(%arg0: i32) -> (i32, i32) {
    %c0_i32 = arith.constant 0 : i32
    %c0_i32_0 = arith.constant 0 : i32
    %c0_i32_1 = arith.constant 0 : i32
    return %c0_i32, %c0_i32_0 : i32, i32
  }
  func.func @transform_7(%arg0: i32) -> (i32, i32) {
    %c0_i32 = arith.constant 0 : i32
    %c0_i32_0 = arith.constant 0 : i32
    %c0_i32_1 = arith.constant 0 : i32
    return %c0_i32, %c0_i32_0 : i32, i32
  }
  func.func @transform_8(%arg0: i32) -> (i32, i32) {
    %c0_i32 = arith.constant 0 : i32
    %c0_i32_0 = arith.constant 0 : i32
    %c0_i32_1 = arith.constant 0 : i32
    return %c0_i32, %c0_i32_0 : i32, i32
  }
  func.func @transform_9(%arg0: i32) -> (i32, i32) {
    %c0_i32 = arith.constant 0 : i32
    %c0_i32_0 = arith.constant 0 : i32
    %c0_i32_1 = arith.constant 0 : i32
    return %c0_i32, %c0_i32_0 : i32, i32
  }
  func.func @transform_10(%arg0: i32) -> (i32, i32) {
    %c0_i32 = arith.constant 0 : i32
    %c0_i32_0 = arith.constant 0 : i32
    %c0_i32_1 = arith.constant 0 : i32
    return %c0_i32, %c0_i32_0 : i32, i32
  }
  func.func @transform_11(%arg0: i32) -> (i32, i32, i32) {
    %c0_i32 = arith.constant 0 : i32
    %c0_i32_0 = arith.constant 0 : i32
    %c0_i32_1 = arith.constant 0 : i32
    return %arg0, %c0_i32, %c0_i32_0 : i32, i32, i32
  }
}

</mosaic_0001>

<bundles_post_ra>
// kernel: improved_mlp_forward.1
= control target key start
LH: loop header
LB: loop body
LE: loop exit
PB: predicated region body
PF: predicated region fallthrough
CT: control target
= control target key end

     0   :  { %v651_v0 = vmov 0.0   ;;  %vm652_vm0 = vmmov 0   ;;  %vm67_vm1 = vcmask 261120   ;;  %vm244_vm2 = vcmask 523264   ;;  %s828_s1 = inlined_call_operand.vmem [shape: bf16[32,128], index: 1, kind: input, shape index: {}]   ;;  %s829_s0 = inlined_call_operand.vmem [shape: f32[16,32], index: 0, kind: input, shape index: {}]   ;;  %s830_s3 = inlined_call_operand.vmem [shape: bf16[128,64], index: 3, kind: input, shape index: {}]   ;;  %s831_s5 = inlined_call_operand.vmem [shape: f32[64,32], index: 5, kind: input, shape index: {}]   ;;  %s832_s2 = inlined_call_operand.vmem [shape: f32[1,128], index: 2, kind: input, shape index: {}]   ;;  %s833_s4 = inlined_call_operand.vmem [shape: f32[1,64], index: 4, kind: input, shape index: {}]   ;;  %s834_s7 = inlined_call_operand.vmem [shape: f32[32,16], index: 7, kind: input, shape index: {}]   ;;  %s835_s6 = inlined_call_operand.vmem [shape: f32[1,32], index: 6, kind: input, shape index: {}]   ;;  %s836_s10 = inlined_call_operand.<no memory space> [shape: f32[1,1], index: 10, kind: input, shape index: {}]   ;;  %s837_s8 = inlined_call_operand.vmem [shape: f32[1,16], index: 8, kind: input, shape index: {}]   ;;  %s838_s9 = inlined_call_operand.vmem [shape: f32[1,16], index: 9, kind: input, shape index: {}]   ;;  %s839_s11 = inlined_call_operand.vmem [shape: f32[1,1,16], index: 11, kind: output, shape index: {}]  }
   0x1   :  { %572 = vmatprep.subr.bf16.mxu0 %v651_v0  ;;  %v641_v1 = vld [vmem:[%s828_s1 + $0x8] sm:$0xff]   ;;  %576 = vmatprep.mubr.msk.bf16.mxu0 %vm652_vm0, %v651_v0  ;;  %v642_v2 = vld [vmem:[%s828_s1] sm:$0xff]   ;;  %v643_v5 = vld [vmem:[%s830_s3 + $0x38] sm:$0xff]   ;;  %v653_v52 = vmov 0   ;;  %v16_v53 = vstv %s836_s10  ;;  %vm433_vm3 = vcmask 130048   ;;  %v429_v63 = vlaneseq }
   0x2   :  { %580 = vmatprep.subr.bf16.mxu1 %v651_v0  ;;  %596 = vmatprep.mubr.msk.bf16.mxu1 %vm652_vm0, %v651_v0  ;;  %v41_v3 = vld [vmem:[%s829_s0] sm:$0xff]  ;;  %v42_v4 = vld [vmem:[%s829_s0 + $0x8] sm:$0xff]  ;;  %v644_v7 = vld [vmem:[%s830_s3 + $0x30] sm:$0xff]   ;;  %17 = vst [vmem:[#allocation2] sm:$0x1] %v16_v53  ;;  %vm513_vm4 = vcmask 122880  }
   0x3   :  { %573 = vmatpush3.bf16.msra.mxu0 %v641_v1  ;;  %v43_v6 = vpack.c.bf16 %v42_v4, %v41_v3  ;;  %581 = vmatpush3.bf16.msra.mxu1 %v643_v5  ;;  %v645_v8 = vld [vmem:[%s830_s3 + $0x28] sm:$0xff]   ;;  %v646_v9 = vld [vmem:[%s830_s3 + $0x20] sm:$0xff]   ;;  %v647_v10 = vld [vmem:[%s830_s3 + $0x18] sm:$0xff]   ;;  %v430_v1 = vshrl.u32 %v429_v63, 7 }
   0x4   :  { %574 = vmatprep.subr.bf16.mxu0 %v651_v0  ;;  %582 = vmatprep.subr.bf16.mxu1 %v651_v0  ;;  %v648_v11 = vld [vmem:[%s830_s3 + $0x10] sm:$0xff]   ;;  %v649_v12 = vld [vmem:[%s830_s3 + $0x8] sm:$0xff]   ;;  %v650_v13 = vld [vmem:[%s830_s3] sm:$0xff]  }
   0x5   :  { %v236_v14 = vld [vmem:[%s831_s5 + $0x38] sm:$0xff]  ;;  %v235_v15 = vld [vmem:[%s831_s5 + $0x30] sm:$0xff]  ;;  %v234_v16 = vld [vmem:[%s831_s5 + $0x28] sm:$0xff]  ;;  %640 = vset.pattern.permute.xlu0 %v653_v52 }
   0x6   :  { %v233_v17 = vld [vmem:[%s831_s5 + $0x20] sm:$0xff]  ;;  %v232_v28 = vld [vmem:[%s831_s5 + $0x18] sm:$0xff]  ;;  %v231_v29 = vld [vmem:[%s831_s5 + $0x10] sm:$0xff] }
   0x7   :  { %575 = vmatpush3.bf16.msra.mxu0 %v642_v2  ;;  %583 = vmatpush3.bf16.msra.mxu1 %v644_v7  ;;  %v519_v18 = vld [vmem:[%s832_s2] ss:$0 sm:$0xff]  ;;  %v230_v30 = vld [vmem:[%s831_s5 + $0x8] sm:$0xff]  ;;  %v331_v41 = vld [vmem:[%s834_s7 + $0x18] sm:$0xff]  ;;  %v431_v2 = vsub.s32 0, %v430_v1 }
   0x8   :  { %584 = vmatprep.subr.bf16.mxu1 %v651_v0  ;;  %600 = vmatprep.subr.mxu0 %v236_v14  ;;  %v229_v31 = vld [vmem:[%s831_s5] sm:$0xff]  ;;  %v330_v42 = vld [vmem:[%s834_s7 + $0x10] sm:$0xff]  ;;  %v329_v43 = vld [vmem:[%s834_s7 + $0x8] sm:$0xff] }
   0x9   :  { %v523_v32 = vld [vmem:[%s833_s4] ss:$0 sm:$0xff] }
   0xa   :  { %577 = vmatmul.mubr.msk.bf16.vlgmr.msra.gmra.mxu0 %vm67_vm1, %v43_v6  ;;  %v328_v44 = vld [vmem:[%s834_s7] sm:$0xff] }
   0xb   :  { %585 = vmatpush3.bf16.msra.mxu1 %v645_v8  ;;  %601 = vmatpush3.msra.mxu0 %v236_v14  ;;  %v532_v45 = vld [vmem:[%s835_s6] ss:$0 sm:$0xff] }
   0xc   :  { %586 = vmatprep.subr.bf16.mxu1 %v651_v0  ;;  %602 = vmatprep.subr.mxu0 %v235_v15  ;;  %v423_v54 = vld [vmem:[#allocation2] sm:$0x1] }
   0xd   :  { %603 = vmatpush3.msra.mxu0 %v235_v15  ;;  %426 = vperm.xlu0 %640, %v423_v54   ;;  %v535_v55 = vld [vmem:[%s837_s8] ss:$0 sm:$0xff] }
   0xe   :  { %604 = vmatprep.subr.mxu0 %v234_v16  ;;  %v422_v62 = vld [vmem:[%s838_s9] sm:$0x1] }
   0xf   :  { %587 = vmatpush3.bf16.msra.mxu1 %v646_v9  ;;  %605 = vmatpush3.msra.mxu0 %v234_v16 }
  0x10   :  { %588 = vmatprep.subr.bf16.mxu1 %v651_v0  ;;  %606 = vmatprep.subr.mxu0 %v233_v17 }
  0x11   :  { %607 = vmatpush3.msra.mxu0 %v233_v17 }
  0x12   :  { %608 = vmatprep.subr.mxu0 %v232_v28 }
  0x13   :  { %589 = vmatpush3.bf16.msra.mxu1 %v647_v10  ;;  %609 = vmatpush3.msra.mxu0 %v232_v28 }
  0x14   :  { %590 = vmatprep.subr.bf16.mxu1 %v651_v0  ;;  %610 = vmatprep.subr.mxu0 %v231_v29 }
  0x15   :  { %611 = vmatpush3.msra.mxu0 %v231_v29 }
  0x16   :  { %612 = vmatprep.subr.mxu0 %v230_v30 }
  0x17   :  { %591 = vmatpush3.bf16.msra.mxu1 %v648_v11  ;;  %613 = vmatpush3.msra.mxu0 %v230_v30 }
  0x18   :  { %592 = vmatprep.subr.bf16.mxu1 %v651_v0  ;;  %614 = vmatprep.subr.mxu0 %v229_v31 }
  0x19   :  { %615 = vmatpush3.msra.mxu0 %v229_v31 }
  0x1a   :  { %619 = vmatprep.subr.mxu0 %v331_v41 }
  0x1b   :  { %593 = vmatpush3.bf16.msra.mxu1 %v649_v12 }
  0x1c   :  { %594 = vmatprep.subr.bf16.mxu1 %v651_v0 }
  0x1f   :  { %595 = vmatpush3.bf16.msra.mxu1 %v650_v13 }
  0x88   :  { %v427_v3 = vpop.permute.xlu0 %426 }
  0x89   :  { %v432_v4 = vrot.slane %v427_v3, %v431_v2 }
  0xca   :  { %v105_v19 = vpop.f32.mrf.mxu0 }
  0xcb   :  { %v106_v21 = vadd.f32 %v519_v18, %v105_v19 }
  0xcc   :  { %v578_v20 = vpop.f32.mrf.mxu0 }
  0xcd   :  { %v112_v25 = vmax.f32 %v106_v21, 0.0 }
  0xce   :  { %v108_v22 = vpop.f32.mrf.mxu0 }
  0xcf   :  { %v109_v23 = vadd.f32 %v519_v18, %v108_v22 }
  0xd0   :  { %v579_v24 = vpop.f32.mrf.mxu0 }
  0xd1   :  { %v113_v26 = vmax.f32 %v109_v23, 0.0 }
  0xd3   :  { %v114_v27 = vpack.c.bf16 %v113_v26, %v112_v25 }
  0xd5   :  { %597 = vmatmul.mubr.bf16.vlgmr.msra.gmra.mxu1 %v114_v27 }
 0x195   :  { %v220_v33 = vpop.f32.mrf.mxu1 }
 0x196   :  { %v221_v34 = vadd.f32 %v523_v32, %v220_v33 }
 0x197   :  { %v598_v35 = vpop.f32.mrf.mxu1 }
 0x198   :  { %v227_v36 = vmax.f32 %v221_v34, 0.0 }
 0x199   :  { %v223_v37 = vpop.f32.mrf.mxu1 }
 0x19a   :  { %v224_v38 = vadd.f32 %v523_v32, %v223_v37  ;;  %616 = vmatprep.mubr.msk.f32.mxu0 %vm244_vm2, %v227_v36 }
 0x19b   :  { %v599_v39 = vpop.f32.mrf.mxu1 }
 0x19c   :  { %v228_v40 = vmax.f32 %v224_v38, 0.0 }
 0x19e   :  { %617 = vmatmul.mubr.msk.f32.vlgmr.msra.gmra.mxu0 %vm244_vm2, %v228_v40 }
 0x19f   :  { %620 = vmatpush3.msra.mxu0 %v331_v41 }
 0x1a0   :  { %621 = vmatprep.subr.mxu0 %v330_v42 }
 0x1a1   :  { %622 = vmatpush3.msra.mxu0 %v330_v42 }
 0x1a2   :  { %623 = vmatprep.subr.mxu0 %v329_v43 }
 0x1a3   :  { %624 = vmatpush3.msra.mxu0 %v329_v43 }
 0x1a4   :  { %625 = vmatprep.subr.mxu0 %v328_v44 }
 0x1a5   :  { %626 = vmatpush3.msra.mxu0 %v328_v44 }
 0x1a6   :  { %630 = vmatprep.subr.mxu0 %v651_v0 }
 0x25e   :  { %v618_v46 = vpop.f32.mrf.mxu0 }
 0x25f   :  { %v323_v47 = vadd.f32 %v618_v46, %v532_v45 }
 0x260   :  { %v317_v48 = vpop.f32.mrf.mxu0 }
 0x261   :  { %v318_v49 = vadd.f32 %v532_v45, %v317_v48  ;;  %v327_v51 = vmax.f32 %v323_v47, 0.0 }
 0x263   :  { %v326_v50 = vmax.f32 %v318_v49, 0.0 }
 0x265   :  { %627 = vmatprep.mubr.msk.f32.mxu0 %vm67_vm1, %v326_v50 }
 0x266   :  { %628 = vmatmul.mubr.msk.f32.vlgmr.msra.gmra.mxu0 %vm67_vm1, %v327_v51 }
 0x267   :  { %634 = vmatprep.mubr.msk.f32.mxu0 %vm652_vm0, %v651_v0 }
 0x326   :  { %v629_v56 = vpop.f32.mrf.mxu0 }
 0x327   :  { %v417_v57 = vadd.f32 %v629_v56, %v535_v55 }
 0x328   :  { %v411_v58 = vpop.f32.mrf.mxu0 }
 0x329   :  { %v421_v59 = vmax.f32 %v417_v57, 0.0  ;;  %v412_v60 = vadd.f32 %v535_v55, %v411_v58 }
 0x32b   :  { %631 = vmatpush3.xpose.msk.msra.mxu0 %vm433_vm3, %v421_v59  ;;  %v420_v61 = vmax.f32 %v412_v60, 0.0 }
 0x32c   :  { %632 = vmatprep.subr.mxu0 %v651_v0 }
 0x32f   :  { %633 = vmatpush3.xpose.msk.msra.mxu0 %vm433_vm3, %v420_v61 }
 0x332   :  { %635 = vmatmul.mubr.msk.f32.vlgmr.msra.gmra.mxu0 %vm433_vm3, %v422_v62 }
 0x3f2   :  { %v509_v5 = vpop.f32.mrf.mxu0 }
 0x3f3   :  { %v510_v6 = vadd.f32 %v509_v5, %v432_v4 }
 0x3f4   :  { %v636_v7 = vpop.f32.mrf.mxu0 }
 0x3f5   :  { %514 = vst.msk [vmem:[%s839_s11] sm:$0x1] %vm513_vm4, %v510_v6 }

</bundles_post_ra>
